<compile_context>
chip_gen: v5e
topology: v5e:2x2
jax: 0.10.0
libtpu: 0.0.40
codegen_flags: <defaults>
</compile_context>

<pallas_src>
import jax
import jax.numpy as jnp
from jax import lax
from jax.experimental import pallas as pl
from jax.experimental.pallas import tpu as pltpu


def _round_up(n, m):
    return ((n + m - 1) // m) * m


def _pad_last(a, target):
    pad = target - a.shape[-1]
    if pad == 0:
        return a
    return jnp.pad(a, [(0, 0)] * (a.ndim - 1) + [(0, pad)])


# ----------------------------------------------------------------------------
# Single forward evaluation:  out = tanh(x @ w1 + b1) @ w2 + b2
# ----------------------------------------------------------------------------
def _ode_func_kernel(x_ref, w1_ref, b1_ref, w2_ref, b2_ref, o_ref):
    # x:  (TB, obs_dim)
    # w1: (obs_dim, nhidden), b1: (1, nhidden)
    # w2: (nhidden, obs_pad), b2: (1, obs_pad)   (zero-padded to 128 lanes)
    h = jnp.dot(x_ref[...], w1_ref[...], preferred_element_type=jnp.float32)
    h = jnp.tanh(h + b1_ref[...])                       # f32 tanh -> EUP slot
    out = jnp.dot(h, w2_ref[...], preferred_element_type=jnp.float32)
    o_ref[...] = (out + b2_ref[...]).astype(o_ref.dtype)   # lane-dense store


def neural_ode_func(t, x, w1, b1, w2, b2, *, tile_b=256):
    """Matches NeuralODEfunc.forward(t, x). `t` is unused (as in PyTorch)."""
    del t
    B, obs_dim = x.shape
    nhidden = w1.shape[1]
    assert w1.shape == (obs_dim, nhidden)
    assert w2.shape == (nhidden, obs_dim)

    obs_pad = _round_up(obs_dim, 128)          # lane-dense output width
    b1_2d = b1.reshape(1, nhidden)
    w2_p = _pad_last(w2, obs_pad)              # (nhidden, obs_pad), zero cols
    b2_p = _pad_last(b2.reshape(1, obs_dim), obs_pad)

    if B <= tile_b:
        # Small batch: grid-less call, everything resident in VMEM once.
        out_p = pl.pallas_call(
            _ode_func_kernel,
            out_shape=jax.ShapeDtypeStruct((B, obs_pad), x.dtype),
            in_specs=[pl.BlockSpec(memory_space=pltpu.MemorySpace.VMEM)] * 5,
            out_specs=pl.BlockSpec(memory_space=pltpu.MemorySpace.VMEM),
        )(x, w1, b1_2d, w2_p, b2_p)
        return out_p[:, :obs_dim]

    # Large batch: tile only B; weights/biases keep a constant block index so
    # they stay resident in VMEM while x / out stream.
    Bp = _round_up(B, tile_b)
    x_p = jnp.pad(x, ((0, Bp - B), (0, 0))) if Bp != B else x
    out_p = pl.pallas_call(
        _ode_func_kernel,
        out_shape=jax.ShapeDtypeStruct((Bp, obs_pad), x.dtype),
        grid=(Bp // tile_b,),
        in_specs=[
            pl.BlockSpec((tile_b, obs_dim), lambda i: (i, 0)),
            pl.BlockSpec((obs_dim, nhidden), lambda i: (0, 0)),
            pl.BlockSpec((1, nhidden), lambda i: (0, 0)),
            pl.BlockSpec((nhidden, obs_pad), lambda i: (0, 0)),
            pl.BlockSpec((1, obs_pad), lambda i: (0, 0)),
        ],
        out_specs=pl.BlockSpec((tile_b, obs_pad), lambda i: (i, 0)),
        compiler_params=pltpu.CompilerParams(
            dimension_semantics=("parallel",)),
    )(x_p, w1, b1_2d, w2_p, b2_p)
    return out_p[:B, :obs_dim]


# ----------------------------------------------------------------------------
# Fused integrator: many f-evaluations in ONE pallas_call (weights stay in
# VMEM, state stays in vregs, fixed-step explicit Euler).
# ----------------------------------------------------------------------------
def _make_euler_kernel(nsteps, dt):
    def kernel(x_ref, w1_ref, b1_ref, w2_ref, b2_ref, o_ref):
        # Load weights / biases once, outside the step loop (no per-step
        # re-broadcast: JAX does not CSE broadcast_in_dim).
        w1 = w1_ref[...]
        b1 = b1_ref[...]
        w2 = w2_ref[...]
        b2 = b2_ref[...]

        def step(_, xc):
            h = jnp.tanh(jnp.dot(xc, w1, preferred_element_type=jnp.float32) + b1)
            dx = jnp.dot(h, w2, preferred_element_type=jnp.float32) + b2
            return xc + dt * dx

        x_final = lax.fori_loop(0, nsteps, step,
                                x_ref[...].astype(jnp.float32), unroll=True)
        o_ref[...] = x_final.astype(o_ref.dtype)

    return kernel


def neural_ode_euler(x, w1, b1, w2, b2, *, nsteps, dt):
    """x_{k+1} = x_k + dt * f(x_k), nsteps times, fused in one kernel."""
    B, obs_dim = x.shape
    nhidden = w1.shape[1]
    obs_pad = _round_up(obs_dim, 128)

    # Keep the state lane-dense: pad x (cols) and w1 (rows) with zeros; padded
    # state columns stay exactly zero across steps (zero w2 cols / b2 entries).
    x_p = _pad_last(x, obs_pad)
    w1_p = jnp.pad(w1, ((0, obs_pad - obs_dim), (0, 0)))
    b1_2d = b1.reshape(1, nhidden)
    w2_p = _pad_last(w2, obs_pad)
    b2_p = _pad_last(b2.reshape(1, obs_dim), obs_pad)

    out_p = pl.pallas_call(
        _make_euler_kernel(int(nsteps), float(dt)),
        out_shape=jax.ShapeDtypeStruct((B, obs_pad), x.dtype),
        in_specs=[pl.BlockSpec(memory_space=pltpu.MemorySpace.VMEM)] * 5,
        out_specs=pl.BlockSpec(memory_space=pltpu.MemorySpace.VMEM),
    )(x_p, w1_p, b1_2d, w2_p, b2_p)
    return out_p[:, :obs_dim]


if __name__ == "__main__":
    obs_dim = 16   # observation dimension
    nhidden = 64   # hidden width (PyTorch default)

    key = jax.random.PRNGKey(0)
    kx, k1, k2, k3, k4 = jax.random.split(key, 5)

    # nn.Linear-style init, weights stored as (in, out) so kernel does x @ W.
    lim1 = 1.0 / float(obs_dim) ** 0.5
    lim2 = 1.0 / float(nhidden) ** 0.5
    w1 = jax.random.uniform(k1, (obs_dim, nhidden), jnp.float32, -lim1, lim1)
    b1 = jax.random.uniform(k2, (nhidden,), jnp.float32, -lim1, lim1)
    w2 = jax.random.uniform(k3, (nhidden, obs_dim), jnp.float32, -lim2, lim2)
    b2 = jax.random.uniform(k4, (obs_dim,), jnp.float32, -lim2, lim2)

    t = jnp.float32(0.0)  # unused, API parity with forward(t, x)

    def f_ref(xx):
        return jnp.tanh(xx @ w1 + b1) @ w2 + b2

    # --- 1) single forward eval, small batch (grid-less path) ---
    B = 8
    x = jax.random.normal(kx, (B, obs_dim), dtype=jnp.float32)
    out = jax.block_until_ready(neural_ode_func(t, x, w1, b1, w2, b2))
    assert out.shape == (B, obs_dim)
    assert jnp.allclose(out, f_ref(x), atol=1e-5, rtol=1e-5)

    # --- 2) single forward eval, larger batch (batch-tiled, 'parallel' grid) ---
    Bl = 512
    xl = jax.random.normal(kx, (Bl, obs_dim), dtype=jnp.float32)
    outl = jax.block_until_ready(
        neural_ode_func(t, xl, w1, b1, w2, b2, tile_b=256))
    assert outl.shape == (Bl, obs_dim)
    assert jnp.allclose(outl, f_ref(xl), atol=1e-5, rtol=1e-5)

    # --- 3) fused integrator: many f-evals inside one pallas_call ---
    nsteps, dt = 16, 0.05
    xT = jax.block_until_ready(
        neural_ode_euler(x, w1, b1, w2, b2, nsteps=nsteps, dt=dt))
    xr = x
    for _ in range(nsteps):
        xr = xr + dt * f_ref(xr)
    assert jnp.allclose(xT, xr, atol=1e-4, rtol=1e-4)

    # TODO(synk): self.nfe (Python-side mutable counter) is caller state, not kernel work.
    print("KERNEL_OK")
</pallas_src>

<mosaic_0001>
module attributes {stable_mosaic.version = 11 : i64} {
  func.func @_ode_func_kernel(%arg0: memref<8x16xf32, #tpu.memory_space<vmem>>, %arg1: memref<16x64xf32, #tpu.memory_space<vmem>>, %arg2: memref<1x64xf32, #tpu.memory_space<vmem>>, %arg3: memref<64x128xf32, #tpu.memory_space<vmem>>, %arg4: memref<1x128xf32, #tpu.memory_space<vmem>>, %arg5: memref<8x128xf32, #tpu.memory_space<vmem>>) attributes {dimension_semantics = [], scalar_prefetch = 0 : i64, scratch_operands = 0 : i64, tpu.core_type = #tpu.core_type<tc>} {
    %c0 = arith.constant 0 : index
    %c0_0 = arith.constant 0 : index
    %0 = vector.load %arg0[%c0, %c0_0] : memref<8x16xf32, #tpu.memory_space<vmem>>, vector<8x16xf32>
    %c0_1 = arith.constant 0 : index
    %c0_2 = arith.constant 0 : index
    %1 = vector.load %arg1[%c0_1, %c0_2] : memref<16x64xf32, #tpu.memory_space<vmem>>, vector<16x64xf32>
    %cst = arith.constant dense<0.000000e+00> : vector<8x64xf32>
    %2 = tpu.matmul %0, %1, %cst {dimension_numbers = #tpu.dot_dimension_numbers<[1], [0], [0], [1], [0, 0, 1, 1], [], []>} : vector<8x16xf32>, vector<16x64xf32>, vector<8x64xf32> -> vector<8x64xf32>
    %c0_3 = arith.constant 0 : index
    %c0_4 = arith.constant 0 : index
    %3 = vector.load %arg2[%c0_3, %c0_4] : memref<1x64xf32, #tpu.memory_space<vmem>>, vector<1x64xf32>
    %4 = vector.broadcast %3 : vector<1x64xf32> to vector<8x64xf32>
    %5 = arith.addf %2, %4 : vector<8x64xf32>
    %6 = math.tanh %5 : vector<8x64xf32>
    %c0_5 = arith.constant 0 : index
    %c0_6 = arith.constant 0 : index
    %7 = vector.load %arg3[%c0_5, %c0_6] : memref<64x128xf32, #tpu.memory_space<vmem>>, vector<64x128xf32>
    %cst_7 = arith.constant dense<0.000000e+00> : vector<8x128xf32>
    %8 = tpu.matmul %6, %7, %cst_7 {dimension_numbers = #tpu.dot_dimension_numbers<[1], [0], [0], [1], [0, 0, 1, 1], [], []>} : vector<8x64xf32>, vector<64x128xf32>, vector<8x128xf32> -> vector<8x128xf32>
    %c0_8 = arith.constant 0 : index
    %c0_9 = arith.constant 0 : index
    %9 = vector.load %arg4[%c0_8, %c0_9] : memref<1x128xf32, #tpu.memory_space<vmem>>, vector<1x128xf32>
    %10 = vector.broadcast %9 : vector<1x128xf32> to vector<8x128xf32>
    %11 = arith.addf %8, %10 : vector<8x128xf32>
    %c0_10 = arith.constant 0 : index
    %c0_11 = arith.constant 0 : index
    %12 = vector.load %arg5[%c0_10, %c0_11] : memref<8x128xf32, #tpu.memory_space<vmem>>, vector<8x128xf32>
    tpu.vector_store %arg5[%c0_10, %c0_11], %11 {strides = array<i32>} : memref<8x128xf32, #tpu.memory_space<vmem>>, vector<8x128xf32>,
    return
  }
}

</mosaic_0001>

<bundles_post_ra>
// kernel: tpu_custom_call.1
= control target key start
LH: loop header
LB: loop body
LE: loop exit
PB: predicated region body
PF: predicated region fallthrough
CT: control target
= control target key end

     0   :  { %10 = vsyncpa [#allocation3], 0  ;;  %s321_s0 = inlined_call_operand.hbm [shape: f32[8,16], index: 0, kind: input, shape index: {}]   ;;  %s322_s1 = inlined_call_operand.hbm [shape: f32[16,64], index: 1, kind: input, shape index: {}]   ;;  %s323_s2 = inlined_call_operand.vmem [shape: f32[1,64], index: 2, kind: input, shape index: {}]   ;;  %s324_s3 = inlined_call_operand.hbm [shape: f32[64,128], index: 3, kind: input, shape index: {}]   ;;  %s325_s4 = inlined_call_operand.vmem [shape: f32[1,128], index: 4, kind: input, shape index: {}]   ;;  %s326_s5 = inlined_call_operand.hbm [shape: f32[8,128], index: 5, kind: output, shape index: {}]  }
   0x1   :  { %11 = vsyncpa [#allocation6], 0  ;;  %s28_s20 = sshll.u32 %s322_s1, 4  ;;  %s29_s20 = int_to_ptr.hbm [resolvable:$true] %s28_s20 }
   0x2   :  { %12 = vsyncpa [#allocation4], 0  ;;  %s267_s21 = smov [#allocation5]   ;;  %s18_s25 = sshll.u32 %s321_s0, 4  ;;  %s19_s25 = int_to_ptr.hbm [resolvable:$true] %s18_s25 }
   0x3   :  { %s30_s22 = sshll.u32 %s267_s21, 4  ;;  %s268_s26 = smov 128   ;;  %s31_s22 = int_to_ptr.vmem [resolvable:$true] %s30_s22 }
   0x4   :  { %s269_s27 = smov 8   ;;  %s270_s28 = smov [#allocation2]  }
   0x5   :  { %36 = dma.hbm_to_vmem [thread:$0]  %s29_s20, 256, %s31_s22, [#allocation6], %s268_s26, %s268_s26, %s269_s27  }
   0x6   :  { %s20_s29 = sshll.u32 %s270_s28, 4  ;;  %s43_s7 = sshll.u32 %s324_s3, 4  ;;  %s21_s29 = int_to_ptr.vmem [resolvable:$true] %s20_s29  ;;  %s44_s7 = int_to_ptr.hbm [resolvable:$true] %s43_s7 }
   0x7   :  { %23 = dma.hbm_to_vmem [thread:$0]  %s19_s25, 128, %s21_s29, [#allocation3]  }
   0x8   :  { %s271_s1 = smov [#allocation7]  }
   0x9   :  { %s45_s8 = sshll.u32 %s271_s1, 4  ;;  %s46_s8 = int_to_ptr.vmem [resolvable:$true] %s45_s8 }
   0xa   :  { %51 = dma.hbm_to_vmem [thread:$0]  %s44_s7, 1024, %s46_s8, [#allocation6], %s268_s26, %s268_s26, %s269_s27  }
   0xb   :  { %261 = dma.done.wait [#allocation3], 128  }
   0xc   :  { %262 = vsyncadd [#allocation3], 4294967168 }
   0xd   :  { %263 = dma.done.wait [#allocation6], 1280  }
   0xe   :  { %264 = vsyncadd [#allocation6], 4294966016  ;;  %v68_v0 = vld [vmem:[#allocation5 + $0x8] sm:$0xff]  ;;  %v67_v1 = vld [vmem:[#allocation5] sm:$0xff]  ;;  %vm73_vm0 = vcmask 130048   ;;  %vm110_vm1 = vcmask 523264  }
   0xf   :  { %91 = vmatpush.msra.mxu0 %v68_v0  ;;  %v66_v2 = vld [vmem:[#allocation2] sm:$0xff]  ;;  %v105_v3 = vld [vmem:[#allocation7 + $0x38] sm:$0xff]  ;;  %v104_v4 = vld [vmem:[#allocation7 + $0x30] sm:$0xff]  ;;  %s272_s11 = smov [#allocation8]   ;;  %s142_s15 = sshll.u32 %s326_s5, 4  ;;  %s143_s15 = int_to_ptr.hbm [resolvable:$true] %s142_s15 }
  0x10   :  { %122 = vmatpush.msra.mxu1 %v105_v3  ;;  %v103_v5 = vld [vmem:[#allocation7 + $0x28] sm:$0xff]  ;;  %v102_v6 = vld [vmem:[#allocation7 + $0x20] sm:$0xff]  ;;  %v101_v7 = vld [vmem:[#allocation7 + $0x18] sm:$0xff]  ;;  %s140_s12 = sshll.u32 %s272_s11, 4  ;;  %s141_s12 = int_to_ptr.vmem [resolvable:$true] %s140_s12 }
  0x11   :  { %92 = vmatpush.msra.mxu0 %v67_v1  ;;  %v100_v8 = vld [vmem:[#allocation7 + $0x10] sm:$0xff]  ;;  %v99_v9 = vld [vmem:[#allocation7 + $0x8] sm:$0xff]  ;;  %v98_v10 = vld [vmem:[#allocation7] sm:$0xff] }
  0x12   :  { %153 = vmatmul.msk.f32.vlgmr.msra.gmra.mxu0 %vm73_vm0, %v66_v2  ;;  %123 = vmatpush.msra.mxu1 %v104_v4  ;;  %v161_v11 = vld [vmem:[%s323_s2] ss:$0 sm:$0xff] }
  0x13   :  { %v162_v15 = vld [vmem:[%s325_s4] ss:$0 sm:$0xff] }
  0x14   :  { %124 = vmatpush.msra.mxu1 %v103_v5 }
  0x16   :  { %125 = vmatpush.msra.mxu1 %v102_v6 }
  0x18   :  { %126 = vmatpush.msra.mxu1 %v101_v7 }
  0x1a   :  { %127 = vmatpush.msra.mxu1 %v100_v8 }
  0x1c   :  { %128 = vmatpush.msra.mxu1 %v99_v9 }
  0x1e   :  { %129 = vmatpush.msra.mxu1 %v98_v10 }
  0x8f   :  { %v94_v12 = vpop.f32.mrf.mxu0 }
  0x90   :  { %v95_v13 = vadd.f32 %v161_v11, %v94_v12 }
  0x92   :  { %163 = vtanh.f32 %v95_v13 }
  0x98   :  { %v164_v14 = vpop.eup %163 }
  0x99   :  { %154 = vmatmul.msk.f32.vlgmr.msra.gmra.mxu1 %vm110_vm1, %v164_v14 }
 0x116   :  { %v131_v16 = vpop.f32.mrf.mxu1 }
 0x117   :  { %v132_v17 = vadd.f32 %v162_v15, %v131_v16 }
 0x119   :  { %134 = vst [vmem:[#allocation8] sm:$0xff] %v132_v17 }
 0x11a   :  { %145 = dma.vmem_to_hbm [thread:$0]  %s141_s12, 128, %s143_s15, [#allocation4]  }
 0x11b   :  { %265 = dma.done.wait [#allocation4], 128  }
 0x11c   :  { %266 = vsyncadd [#allocation4], 4294967168 }
 0x11d   :  { %150 = vsyncpa [#allocation3], 1 }
 0x11e   :  { %151 = vsyncpa [#allocation6], 1 }
 0x11f   :  { %152 = vsyncpa [#allocation4], 1 }

</bundles_post_ra>
